<compile_context>
chip_gen: v6e
topology: v6e:2x2x1
jax: 0.10.0
libtpu: 0.0.40
codegen_flags: <defaults>
</compile_context>

<pallas_src>
import jax
import jax.numpy as jnp
from jax import lax
from jax.experimental import pallas as pl
from jax.experimental.pallas import tpu as pltpu

# Problem sizes implied by the module (Linear(224,2) => C*L/2 = 224 => L = 16).
N = 2            # batch
C = 28           # conv1 in/out channels
L = 16           # sequence length
K = 3            # conv kernel size (padding=1 keeps length)
POOL = 2         # max_pool1d kernel/stride
LP = L // POOL   # pooled length = 8
FEAT = C * LP    # 224 flat features
OUT = 2          # fc1 output features
NC = N * C       # batch-fused row count = 56
PW = L - 1       # pair-max lane width = 15 (pooled values live on even lanes)


def cnn_kernel(xp_ref, wconv_ref, wslab_ref, wbsum_ref, o_ref):
    """Whole forward pass in VMEM, single grid step.

    xp_ref    : (NC, L+2)      f32  input rows n*C+c, zero-padded on both lane ends
    wconv_ref : (NC, 3*NC+1)   f32  [blockdiag(W_k=0..2) | b1] (bias folded)
    wslab_ref : (OUT, NC+1, PW)f32  FC weight slabs, zeros on odd lanes,
                                    row NC holds [bf[o], 0, ...] (bias folded)
    wbsum_ref : (N, NC+1)      f32  per-sample block indicator, column NC = 1
    o_ref     : (N, OUT)       f32
    """
    xp = xp_ref[...]                                              # (56, 18)

    # Tap-shifted activations: static lane slices of the host-padded input
    # (zeros come from the padding, no masks, no extra MXU dispatches), stacked
    # on the 8-aligned sublane axis together with a ones row for the conv bias.
    x_cat = jnp.concatenate(
        [xp[:, 0:L],                      # tap k=0  -> x[l-1] (zero at l=0)
         xp[:, 1:L + 1],                  # tap k=1  -> x[l]
         xp[:, 2:L + 2],                  # tap k=2  -> x[l+1] (zero at l=L-1)
         jnp.ones((1, L), jnp.float32)],  # bias row
        axis=0)                                                   # (169, 16)

    # conv1 (+ bias) in ONE MXU matmul with contraction depth 169, then ReLU.
    acc = jnp.dot(wconv_ref[...], x_cat,
                  preferred_element_type=jnp.float32)             # (56, 16)
    acc = jnp.maximum(acc, 0.0)

    # max_pool1d(kernel=2, stride=2): pair-max of lane-offset slices.
    # pair[:, 2p] = max(acc[:, 2p], acc[:, 2p+1]) is the pooled value; odd
    # lanes hold garbage that the FC slabs zero out.
    pair = jnp.maximum(acc[:, 0:L - 1], acc[:, 1:L])              # (56, 15)
    pm = jnp.concatenate(
        [pair, jnp.ones((1, PW), jnp.float32)], axis=0)           # (57, 15) bias row

    # FC folded into slab multiplies: no (56,8)->(2,224) flatten relayout.
    # out[n,o] = sum_r wbsum[n,r] * sum_j pm[r,j]*wslab[o,r,j]   (+ bf via row 56)
    s0 = jnp.sum(pm * wslab_ref[0], axis=1, keepdims=True)        # (57, 1)
    s1 = jnp.sum(pm * wslab_ref[1], axis=1, keepdims=True)        # (57, 1)
    scat = jnp.concatenate([s0, s1], axis=1)                      # (57, 2)
    o_ref[...] = jnp.dot(wbsum_ref[...], scat,
                         preferred_element_type=jnp.float32)      # (2, 2)


def prepare_params(w1, b1, wf, bf):
    """Build all constant operands ONCE from the module parameters.

    w1: (C, C, K) Conv1d weight, b1: (C,), wf: (OUT, FEAT) Linear weight, bf: (OUT,).
    """
    f32 = jnp.float32
    w1 = w1.astype(f32)
    b1 = b1.astype(f32)
    wf = wf.astype(f32)
    bf = bf.astype(f32)
    eye_n = jnp.eye(N, dtype=f32)

    # Conv weight: block-diagonal per sample for each tap, concatenated on the
    # contraction axis, with the conv bias as the final column.
    taps = [jnp.kron(eye_n, w1[:, :, k]) for k in range(K)]        # K x (56, 56)
    b1_col = jnp.tile(b1, N).reshape(NC, 1)                        # (56, 1)
    w_conv = jnp.concatenate(taps + [b1_col], axis=1)              # (56, 169)

    # FC weight slabs: wslab[o, n*C+c, 2p] = Wf[o, c*LP+p]; zeros on odd lanes;
    # extra row NC carries the fc bias at lane 0 (paired with the ones row).
    wf_r = wf.reshape(OUT, C, LP)                                  # (2, 28, 8)
    slab_core = jnp.zeros((OUT, C, PW), f32).at[:, :, 0::2].set(wf_r)
    slab_core = jnp.tile(slab_core, (1, N, 1))                     # (2, 56, 15)
    bias_row = jnp.zeros((OUT, 1, PW), f32).at[:, 0, 0].set(bf)    # (2, 1, 15)
    w_slab = jnp.concatenate([slab_core, bias_row], axis=1)        # (2, 57, 15)

    # Per-sample block-sum matrix; last column = 1 picks up the fc-bias row.
    w_bsum = jnp.concatenate(
        [jnp.kron(eye_n, jnp.ones((1, C), f32)),
         jnp.ones((N, 1), f32)], axis=1)                           # (2, 57)

    return w_conv, w_slab, w_bsum


@jax.jit
def cnnnet_forward(x, w_conv, w_slab, w_bsum):
    """x: (N, C, L). Constants come from prepare_params() (built once)."""
    xp = jnp.pad(x.astype(jnp.float32).reshape(NC, L), ((0, 0), (1, 1)))  # (56, 18)
    return pl.pallas_call(
        cnn_kernel,
        out_shape=jax.ShapeDtypeStruct((N, OUT), jnp.float32),
        in_specs=[pl.BlockSpec(memory_space=pltpu.MemorySpace.VMEM)] * 4,
        out_specs=pl.BlockSpec(memory_space=pltpu.MemorySpace.VMEM),
    )(xp, w_conv, w_slab, w_bsum)


def reference_forward(x, w1, b1, wf, bf):
    """Plain-JAX reference of the PyTorch forward (for validation)."""
    hp = lax.Precision.HIGHEST
    xpad = jnp.pad(x, ((0, 0), (0, 0), (1, 1)))
    conv = b1[None, :, None]
    for k in range(K):
        conv = conv + jnp.einsum('oi,nil->nol', w1[:, :, k],
                                 xpad[:, :, k:k + L], precision=hp)
    r = jnp.maximum(conv, 0.0)
    pooled = jnp.max(r.reshape(N, C, LP, POOL), axis=-1)
    flat = pooled.reshape(N, FEAT)
    return jnp.dot(flat, wf.T, precision=hp) + bf[None, :]


if __name__ == "__main__":
    key = jax.random.PRNGKey(0)
    kx, kw1, kb1, kwf, kbf = jax.random.split(key, 5)

    # Deterministic synthetic inputs / parameters (shapes from __init__).
    x = jax.random.normal(kx, (N, C, L), jnp.float32)
    w1 = jax.random.normal(kw1, (C, C, K), jnp.float32) * 0.1    # Conv1d weight
    b1 = jax.random.normal(kb1, (C,), jnp.float32) * 0.1         # Conv1d bias
    wf = jax.random.normal(kwf, (OUT, FEAT), jnp.float32) * 0.1  # Linear weight
    bf = jax.random.normal(kbf, (OUT,), jnp.float32) * 0.1       # Linear bias

    # Constant operands are built exactly once (not per forward call).
    w_conv, w_slab, w_bsum = prepare_params(w1, b1, wf, bf)
    w_conv, w_slab, w_bsum = jax.block_until_ready((w_conv, w_slab, w_bsum))

    out = cnnnet_forward(x, w_conv, w_slab, w_bsum)
    out = jax.block_until_ready(out)

    ref = reference_forward(x, w1, b1, wf, bf)
    assert out.shape == (N, OUT), out.shape
    assert jnp.allclose(out, ref, atol=1e-3, rtol=1e-3), (out, ref)

    print("KERNEL_OK")
</pallas_src>

<mosaic_0001>
module attributes {stable_mosaic.version = 11 : i64} {
  func.func @cnn_kernel(%arg0: memref<56x18xf32, #tpu.memory_space<vmem>>, %arg1: memref<56x169xf32, #tpu.memory_space<vmem>>, %arg2: memref<2x57x15xf32, #tpu.memory_space<vmem>>, %arg3: memref<2x57xf32, #tpu.memory_space<vmem>>, %arg4: memref<2x2xf32, #tpu.memory_space<vmem>>) attributes {dimension_semantics = [], scalar_prefetch = 0 : i64, scratch_operands = 0 : i64, tpu.core_type = #tpu.core_type<tc>} {
    %c0 = arith.constant 0 : index
    %c0_0 = arith.constant 0 : index
    %0 = vector.load %arg0[%c0, %c0_0] : memref<56x18xf32, #tpu.memory_space<vmem>>, vector<56x18xf32>
    %1 = vector.extract_strided_slice %0 {offsets = [0, 0], sizes = [56, 16], strides = [1, 1]} : vector<56x18xf32> to vector<56x16xf32>
    %2 = vector.extract_strided_slice %0 {offsets = [0, 1], sizes = [56, 16], strides = [1, 1]} : vector<56x18xf32> to vector<56x16xf32>
    %3 = vector.extract_strided_slice %0 {offsets = [0, 2], sizes = [56, 16], strides = [1, 1]} : vector<56x18xf32> to vector<56x16xf32>
    %cst = arith.constant 1.000000e+00 : f32
    %4 = vector.broadcast %cst : f32 to vector<1x16xf32>
    %5 = tpu.concatenate %1, %2, %3, %4 in 0 : vector<56x16xf32>, vector<56x16xf32>, vector<56x16xf32>, vector<1x16xf32> -> vector<169x16xf32>
    %c0_1 = arith.constant 0 : index
    %c0_2 = arith.constant 0 : index
    %6 = vector.load %arg1[%c0_1, %c0_2] : memref<56x169xf32, #tpu.memory_space<vmem>>, vector<56x169xf32>
    %cst_3 = arith.constant dense<0.000000e+00> : vector<56x16xf32>
    %7 = tpu.matmul %6, %5, %cst_3 {dimension_numbers = #tpu.dot_dimension_numbers<[1], [0], [0], [1], [0, 0, 1, 1], [], []>} : vector<56x169xf32>, vector<169x16xf32>, vector<56x16xf32> -> vector<56x16xf32>
    %cst_4 = arith.constant 0.000000e+00 : f32
    %8 = vector.broadcast %cst_4 : f32 to vector<56x16xf32>
    %9 = arith.maximumf %7, %8 : vector<56x16xf32>
    %10 = vector.extract_strided_slice %9 {offsets = [0, 0], sizes = [56, 15], strides = [1, 1]} : vector<56x16xf32> to vector<56x15xf32>
    %11 = vector.extract_strided_slice %9 {offsets = [0, 1], sizes = [56, 15], strides = [1, 1]} : vector<56x16xf32> to vector<56x15xf32>
    %12 = arith.maximumf %10, %11 : vector<56x15xf32>
    %cst_5 = arith.constant 1.000000e+00 : f32
    %13 = vector.broadcast %cst_5 : f32 to vector<1x15xf32>
    %14 = tpu.concatenate %12, %13 in 0 : vector<56x15xf32>, vector<1x15xf32> -> vector<57x15xf32>
    %c0_6 = arith.constant 0 : index
    %c0_7 = arith.constant 0 : index
    %c0_8 = arith.constant 0 : index
    %15 = vector.load %arg2[%c0_6, %c0_7, %c0_8] : memref<2x57x15xf32, #tpu.memory_space<vmem>>, vector<1x57x15xf32>
    %16 = vector.shape_cast %15 : vector<1x57x15xf32> to vector<57x15xf32>
    %17 = arith.mulf %14, %16 : vector<57x15xf32>
    %cst_9 = arith.constant dense<0.000000e+00> : vector<57xf32>
    %18 = vector.multi_reduction <add>, %17, %cst_9 [1] : vector<57x15xf32> to vector<57xf32>
    %19 = vector.shape_cast %18 : vector<57xf32> to vector<57x1xf32>
    %c1 = arith.constant 1 : index
    %c0_10 = arith.constant 0 : index
    %c0_11 = arith.constant 0 : index
    %20 = vector.load %arg2[%c1, %c0_10, %c0_11] : memref<2x57x15xf32, #tpu.memory_space<vmem>>, vector<1x57x15xf32>
    %21 = vector.shape_cast %20 : vector<1x57x15xf32> to vector<57x15xf32>
    %22 = arith.mulf %14, %21 : vector<57x15xf32>
    %cst_12 = arith.constant dense<0.000000e+00> : vector<57xf32>
    %23 = vector.multi_reduction <add>, %22, %cst_12 [1] : vector<57x15xf32> to vector<57xf32>
    %24 = vector.shape_cast %23 : vector<57xf32> to vector<57x1xf32>
    %25 = tpu.concatenate %19, %24 in 1 : vector<57x1xf32>, vector<57x1xf32> -> vector<57x2xf32>
    %c0_13 = arith.constant 0 : index
    %c0_14 = arith.constant 0 : index
    %26 = vector.load %arg3[%c0_13, %c0_14] : memref<2x57xf32, #tpu.memory_space<vmem>>, vector<2x57xf32>
    %cst_15 = arith.constant dense<0.000000e+00> : vector<2x2xf32>
    %27 = tpu.matmul %26, %25, %cst_15 {dimension_numbers = #tpu.dot_dimension_numbers<[1], [0], [0], [1], [0, 0, 1, 1], [], []>} : vector<2x57xf32>, vector<57x2xf32>, vector<2x2xf32> -> vector<2x2xf32>
    %c0_16 = arith.constant 0 : index
    %c0_17 = arith.constant 0 : index
    %28 = vector.load %arg4[%c0_16, %c0_17] : memref<2x2xf32, #tpu.memory_space<vmem>>, vector<2x2xf32>
    tpu.vector_store %arg4[%c0_16, %c0_17], %27 {strides = array<i32>} : memref<2x2xf32, #tpu.memory_space<vmem>>, vector<2x2xf32>,
    return
  }
}

</mosaic_0001>

<bundles_post_ra>
// kernel: cnnnet_forward.1
= control target key start
LH: loop header
LB: loop body
LE: loop exit
PB: predicated region body
PF: predicated region fallthrough
CT: control target
= control target key end

     0   :  { %s514_s19 = smov 126   ;;  %s515_s20 = smov 127   ;;  %v516_v4 = vmov 0.0   ;;  %s757_s0 = inlined_call_operand.vmem [shape: f32[56,18], index: 0, kind: input, shape index: {}]   ;;  %s758_s1 = inlined_call_operand.vmem [shape: f32[56,169], index: 1, kind: input, shape index: {}]   ;;  %s759_s2 = inlined_call_operand.vmem [shape: f32[2,57,15], index: 2, kind: input, shape index: {}]   ;;  %s760_s3 = inlined_call_operand.vmem [shape: f32[2,57], index: 3, kind: input, shape index: {}]   ;;  %s761_s4 = inlined_call_operand.hbm [shape: f32[2,2], index: 4, kind: output, shape index: {}]  }
   0x1   :  { %v548_v0 = vld [vmem:[%s757_s0 + $0x8] sm:$0xff]  ;;  %v24_v1 = vld [vmem:[%s757_s0 + $0x30] sm:$0xff]  ;;  %v558_v2 = vld [vmem:[%s757_s0] sm:$0xff]  ;;  %114 = vmatprep.subr.mxu0 %v516_v4  ;;  %467 = vmatprep.subr.mxu1 %v516_v4 }
   0x2   :  { %55 = vrot.lane.b32.xlu0 %v548_v0, %s514_s19  ;;  %44 = vrot.lane.b32.xlu1 %v24_v1, %s515_s20  ;;  %v23_v3 = vld [vmem:[%s757_s0 + $0x28] sm:$0xff] }
   0x3   :  { %9 = vsyncpa [#allocation3], 0  ;;  %v22_v5 = vld [vmem:[%s757_s0 + $0x20] sm:$0xff]  ;;  %v21_v6 = vld [vmem:[%s757_s0 + $0x18] sm:$0xff]  ;;  %vm88_vm0 = vcmask 334848   ;;  %vm110_vm1 = vcmask 1040384  }
   0x4   :  { %v20_v7 = vld [vmem:[%s757_s0 + $0x10] sm:$0xff]  ;;  %v75_v8 = vld [vmem:[%s758_s1 + $0x8] sm:$0xff]  ;;  %v517_v20 = vmov 1.0   ;;  %v74_v24 = vld [vmem:[%s758_s1] sm:$0xff]  ;;  %vm293_vm2 = vcmask 114688   ;;  %vm271_vm3 = vcmask 121856  }
   0x5   :  { %441 = vmatprep.mubr.msk.f32.mxu0 %vm88_vm0, %v75_v8  ;;  %v77_v25 = vld [vmem:[%s758_s1 + $0x18] sm:$0xff]  ;;  %v76_v26 = vld [vmem:[%s758_s1 + $0x10] sm:$0xff]  ;;  %v79_v27 = vld [vmem:[%s758_s1 + $0x28] sm:$0xff]  ;;  %vm518_vm4 = vmmov 0   ;;  %vm337_vm5 = vcmask 7168   ;;  %vm347_vm6 = vcmask 465920  }
   0x6   :  { %53 = vrot.lane.b32.xlu0 %v558_v2, %s514_s19  ;;  %42 = vrot.lane.b32.xlu1 %v23_v3, %s515_s20  ;;  %v78_v28 = vld [vmem:[%s758_s1 + $0x20] sm:$0xff]  ;;  %v81_v29 = vld [vmem:[%s758_s1 + $0x38] sm:$0xff]  ;;  %s519_s10 = smov [#allocation2]   ;;  %vm424_vm7 = vcmask 9216  }
   0x7   :  { %v80_v30 = vld [vmem:[%s758_s1 + $0x30] sm:$0xff]  ;;  %v83_v31 = vld [vmem:[%s758_s1 + $0x48] sm:$0xff]  ;;  %v82_v32 = vld [vmem:[%s758_s1 + $0x40] sm:$0xff]  ;;  %483 = vmatprep.mubr.msk.f32.mxu1 %vm518_vm4, %v516_v4 }
   0x8   :  { %v85_v33 = vld [vmem:[%s758_s1 + $0x58] sm:$0xff]  ;;  %v84_v34 = vld [vmem:[%s758_s1 + $0x50] sm:$0xff]  ;;  %v87_v35 = vld [vmem:[%s758_s1 + $0x68] sm:$0xff] }
   0x9   :  { %v86_v36 = vld [vmem:[%s758_s1 + $0x60] sm:$0xff]  ;;  %v263_v58 = vld [vmem:[%s759_s2 + $0x38] sm:$0x1] }
   0xa   :  { %40 = vrot.lane.b32.xlu0 %v22_v5, %s515_s20  ;;  %38 = vrot.lane.b32.xlu1 %v21_v6, %s515_s20  ;;  %v294_v59 = vsel %vm293_vm2, %v263_v58, 0.0  ;;  %v455_v60 = vld [vmem:[%s759_s2 + $0x78] sm:$0x1] }
   0xb   :  { %v334_v61 = vsel %vm293_vm2, %v455_v60, 0.0 }
   0xe   :  { %36 = vrot.lane.b32.xlu0 %v20_v7, %s515_s20  ;;  %34 = vrot.lane.b32.xlu1 %v548_v0, %s515_s20 }
  0x12   :  { %32 = vrot.lane.b32.xlu0 %v558_v2, %s515_s20  ;;  %65 = vrot.lane.b32.xlu1 %v24_v1, %s514_s19 }
  0x16   :  { %63 = vrot.lane.b32.xlu0 %v23_v3, %s514_s19  ;;  %61 = vrot.lane.b32.xlu1 %v22_v5, %s514_s19 }
  0x1a   :  { %59 = vrot.lane.b32.xlu0 %v21_v6, %s514_s19  ;;  %57 = vrot.lane.b32.xlu1 %v20_v7, %s514_s19 }
  0x74   :  { %v56_v9 = vpop.permute.xlu0 %55  ;;  %v45_v10 = vpop.permute.xlu1 %44 }
  0x75   :  { %115 = vmatpush1.msra.mxu0 %v56_v9  ;;  %v452_v9 = vld [vmem:[%s759_s2 + $0x60] sm:$0xff] }
  0x76   :  { %116 = vmatprep.subr.mxu0 %v516_v4 }
  0x78   :  { %v54_v11 = vpop.permute.xlu0 %53  ;;  %v43_v12 = vpop.permute.xlu1 %42 }
  0x79   :  { %117 = vmatpush1.msra.mxu0 %v54_v11 }
  0x7a   :  { %118 = vmatprep.subr.mxu0 %v516_v4 }
  0x7b   :  { %119 = vmatpush1.msra.mxu0 %v45_v10  ;;  %v260_v10 = vld [vmem:[%s759_s2 + $0x20] sm:$0xff] }
  0x7c   :  { %120 = vmatprep.subr.mxu0 %v516_v4  ;;  %v41_v13 = vpop.permute.xlu0 %40  ;;  %v39_v14 = vpop.permute.xlu1 %38 }
  0x7d   :  { %121 = vmatpush1.msra.mxu0 %v43_v12 }
  0x7e   :  { %122 = vmatprep.subr.mxu0 %v516_v4 }
  0x7f   :  { %123 = vmatpush1.msra.mxu0 %v41_v13 }
  0x80   :  { %124 = vmatprep.subr.mxu0 %v516_v4  ;;  %v37_v15 = vpop.permute.xlu0 %36  ;;  %v35_v16 = vpop.permute.xlu1 %34 }
  0x81   :  { %125 = vmatpush1.msra.mxu0 %v39_v14  ;;  %v453_v14 = vld [vmem:[%s759_s2 + $0x68] sm:$0xff] }
  0x82   :  { %126 = vmatprep.subr.mxu0 %v516_v4 }
  0x83   :  { %127 = vmatpush1.msra.mxu0 %v37_v15  ;;  %v261_v15 = vld [vmem:[%s759_s2 + $0x28] sm:$0xff] }
  0x84   :  { %128 = vmatprep.subr.mxu0 %v516_v4  ;;  %v33_v17 = vpop.permute.xlu0 %32  ;;  %v66_v18 = vpop.permute.xlu1 %65 }
  0x85   :  { %129 = vmatpush1.msra.mxu0 %v35_v16 }
  0x86   :  { %130 = vmatprep.subr.mxu0 %v516_v4 }
  0x87   :  { %131 = vmatpush1.msra.mxu0 %v33_v17 }
  0x88   :  { %132 = vmatprep.subr.mxu0 %v516_v4  ;;  %v64_v19 = vpop.permute.xlu0 %63  ;;  %v62_v21 = vpop.permute.xlu1 %61 }
  0x89   :  { %133 = vmatpush1.msra.mxu0 %v24_v1  ;;  %v451_v1 = vld [vmem:[%s759_s2 + $0x58] sm:$0xff] }
  0x8a   :  { %134 = vmatprep.subr.mxu0 %v516_v4 }
  0x8b   :  { %135 = vmatpush1.msra.mxu0 %v23_v3 }
  0x8c   :  { %136 = vmatprep.subr.mxu0 %v516_v4  ;;  %v60_v22 = vpop.permute.xlu0 %59  ;;  %v58_v23 = vpop.permute.xlu1 %57 }
  0x8d   :  { %137 = vmatpush1.msra.mxu0 %v22_v5 }
  0x8e   :  { %138 = vmatprep.subr.mxu0 %v516_v4 }
  0x8f   :  { %139 = vmatpush1.msra.mxu0 %v21_v6 }
  0x90   :  { %140 = vmatprep.subr.mxu0 %v516_v4 }
  0x91   :  { %141 = vmatpush1.msra.mxu0 %v20_v7 }
  0x92   :  { %142 = vmatprep.subr.mxu0 %v516_v4 }
  0x93   :  { %143 = vmatpush1.msra.mxu0 %v548_v0 }
  0x94   :  { %144 = vmatprep.subr.mxu0 %v516_v4 }
  0x95   :  { %145 = vmatpush1.msra.mxu0 %v558_v2  ;;  %v259_v2 = vld [vmem:[%s759_s2 + $0x18] sm:$0xff] }
  0x96   :  { %166 = vmatprep.subr.mxu0 %v516_v4 }
  0x97   :  { %440 = vmatpush2.msk.msra.mxu0 %vm110_vm1, %v517_v20 }
  0x98   :  { %168 = vmatprep.subr.mxu0 %v516_v4 }
  0x99   :  { %169 = vmatpush2.msra.mxu0 %v66_v18 }
  0x9a   :  { %170 = vmatprep.subr.mxu0 %v516_v4 }
  0x9b   :  { %171 = vmatpush2.msra.mxu0 %v64_v19 }
  0x9c   :  { %172 = vmatprep.subr.mxu0 %v516_v4 }
  0x9d   :  { %173 = vmatpush2.msra.mxu0 %v62_v21 }
  0x9e   :  { %174 = vmatprep.subr.mxu0 %v516_v4 }
  0x9f   :  { %175 = vmatpush2.msra.mxu0 %v60_v22 }
  0xa0   :  { %176 = vmatprep.subr.mxu0 %v516_v4 }
  0xa1   :  { %177 = vmatpush2.msra.mxu0 %v58_v23 }
  0xa2   :  { %179 = vmatmul.mubr.f32.vlgmr.msra.gmra.mxu0 %v74_v24  ;;  %v454_v24 = vld [vmem:[%s759_s2 + $0x70] sm:$0xff] }
  0xa3   :  { %442 = vmatprep.mubr.msk.f32.mxu0 %vm88_vm0, %v77_v25  ;;  %v262_v25 = vld [vmem:[%s759_s2 + $0x30] sm:$0xff] }
  0xa6   :  { %184 = vmatmul.mubr.f32.gmra.mxu0 %v76_v26 }
  0xa7   :  { %443 = vmatprep.mubr.msk.f32.mxu0 %vm88_vm0, %v79_v27 }
  0xaa   :  { %189 = vmatmul.mubr.f32.gmra.mxu0 %v78_v28 }
  0xab   :  { %444 = vmatprep.mubr.msk.f32.mxu0 %vm88_vm0, %v81_v29 }
  0xae   :  { %194 = vmatmul.mubr.f32.gmra.mxu0 %v80_v30 }
  0xaf   :  { %445 = vmatprep.mubr.msk.f32.mxu0 %vm88_vm0, %v83_v31 }
  0xb2   :  { %199 = vmatmul.mubr.f32.gmra.mxu0 %v82_v32  ;;  %v450_v32 = vld [vmem:[%s759_s2 + $0x50] sm:$0xff] }
  0xb3   :  { %446 = vmatprep.mubr.msk.f32.mxu0 %vm88_vm0, %v85_v33  ;;  %v258_v33 = vld [vmem:[%s759_s2 + $0x10] sm:$0xff] }
  0xb6   :  { %204 = vmatmul.mubr.f32.gmra.mxu0 %v84_v34 }
  0xb7   :  { %447 = vmatprep.mubr.msk.f32.mxu0 %vm88_vm0, %v87_v35 }
  0xba   :  { %209 = vmatmul.mubr.f32.gmra.mxu0 %v86_v36 }
 0x162   :  { %v656_v37 = vpop.f32.mrf.mxu0 }
 0x163   :  { %v214_v57 = vmax.f32 %v656_v37, 0.0 }
 0x164   :  { %v182_v38 = vpop.f32.mrf.mxu0 }
 0x166   :  { %v658_v39 = vpop.f32.mrf.mxu0 }
 0x167   :  { %v215_v54 = vmax.f32 %v658_v39, 0.0  ;;  %v449_v39 = vld [vmem:[%s759_s2 + $0x48] sm:$0xff] }
 0x168   :  { %v187_v40 = vpop.f32.mrf.mxu0 }
 0x16a   :  { %v660_v41 = vpop.f32.mrf.mxu0 }
 0x16b   :  { %v216_v56 = vmax.f32 %v660_v41, 0.0  ;;  %v257_v41 = vld [vmem:[%s759_s2 + $0x8] sm:$0xff] }
 0x16c   :  { %v192_v42 = vpop.f32.mrf.mxu0 }
 0x16e   :  { %v195_v43 = vpop.f32.mrf.mxu0 }
 0x16f   :  { %v217_v51 = vmax.f32 %v195_v43, 0.0 }
 0x170   :  { %v197_v44 = vpop.f32.mrf.mxu0 }
 0x172   :  { %v200_v45 = vpop.f32.mrf.mxu0 }
 0x173   :  { %v218_v55 = vmax.f32 %v200_v45, 0.0 }
 0x174   :  { %v202_v46 = vpop.f32.mrf.mxu0 }
 0x176   :  { %v205_v47 = vpop.f32.mrf.mxu0 }
 0x177   :  { %v219_v48 = vmax.f32 %v205_v47, 0.0  ;;  %v448_v47 = vld [vmem:[%s759_s2 + $0x40] sm:$0xff] }
 0x178   :  { %v207_v49 = vpop.f32.mrf.mxu0 }
 0x179   :  { %238 = vrot.lane.b32.xlu1 %v219_v48, %s515_s20 }
 0x17a   :  { %v210_v50 = vpop.f32.mrf.mxu0 }
 0x17b   :  { %v220_v52 = vmax.f32 %v210_v50, 0.0 }
 0x17c   :  { %v212_v53 = vpop.f32.mrf.mxu0 }
 0x17d   :  { %234 = vrot.lane.b32.xlu1 %v217_v51, %s515_s20  ;;  %240 = vrot.lane.b32.xlu0 %v220_v52, %s515_s20 }
 0x181   :  { %230 = vrot.lane.b32.xlu1 %v215_v54, %s515_s20  ;;  %236 = vrot.lane.b32.xlu0 %v218_v55, %s515_s20 }
 0x185   :  { %232 = vrot.lane.b32.xlu0 %v216_v56, %s515_s20 }
 0x189   :  { %228 = vrot.lane.b32.xlu0 %v214_v57, %s515_s20  ;;  %s432_s20 = sshll.u32 %s519_s10, 4  ;;  %s433_s20 = int_to_ptr.vmem [resolvable:$true] %s432_s20 }
 0x18a   :  { %s492_s11 = scalar_lea.vmem %s433_s20, 32  ;;  %p497_p1 = scmp.lt.s32.totalorder %s433_s20, %s433_s20 }
 0x18b   :  { %p493_p0 = scmp.ne.s32.totalorder %s433_s20, %s492_s11  ;;  %p498_p2 = scmp.lt.s32.totalorder %s492_s11, %s492_s11 }
 0x18d   :  { %p499_p3 = por %p498_p2, %p497_p1 }
 0x18f   :  { %p500_p4 = pnand %p499_p3, %p493_p0 }
 0x1a5   :  { %295 = vadd.xlane.f32.xlu1 %v294_v59 }
 0x1a8   :  { %335 = vadd.xlane.f32.xlu0 %v334_v61 }
 0x1eb   :  { %v239_v62 = vpop.permute.xlu1 %238 }
 0x1ec   :  { %v254_v7 = vmax.f32 %v219_v48, %v239_v62  ;;  %v256_v48 = vld [vmem:[%s759_s2] sm:$0xff] }
 0x1ee   :  { %v311_v18 = vmul.f32 %v453_v14, %v254_v7  ;;  %v269_v22 = vmul.f32 %v261_v15, %v254_v7  ;;  %v346_v15 = vld [vmem:[%s760_s3] sm:$0x3] }
 0x1ef   :  { %v235_v63 = vpop.permute.xlu1 %234  ;;  %v241_v0 = vpop.permute.xlu0 %240 }
 0x1f0   :  { %v252_v3 = vmax.f32 %v217_v51, %v235_v63  ;;  %v255_v19 = vmax.f32 %v220_v52, %v241_v0  ;;  %v328_v26 = vsel %vm271_vm3, %v311_v18, 0.0  ;;  %v287_v29 = vsel %vm271_vm3, %v269_v22, 0.0 }
 0x1f2   :  { %v309_v5 = vmul.f32 %v451_v1, %v252_v3  ;;  %v267_v6 = vmul.f32 %v259_v2, %v252_v3  ;;  %v312_v30 = vmul.f32 %v454_v24, %v255_v19  ;;  %v270_v31 = vmul.f32 %v262_v25, %v255_v19 }
 0x1f3   :  { %v237_v8 = vpop.permute.xlu0 %236  ;;  %v231_v27 = vpop.permute.xlu1 %230 }
 0x1f4   :  { %v253_v11 = vmax.f32 %v218_v55, %v237_v8  ;;  %v322_v12 = vsel %vm271_vm3, %v309_v5, 0.0  ;;  %v281_v13 = vsel %vm271_vm3, %v267_v6, 0.0  ;;  %v250_v34 = vmax.f32 %v215_v54, %v231_v27 }
 0x1f5   :  { %323 = vadd.xlane.f32.xlu1 %v322_v12  ;;  %282 = vadd.xlane.f32.xlu0 %v281_v13  ;;  %v331_v35 = vsel %vm271_vm3, %v312_v30, 0.0  ;;  %v290_v36 = vsel %vm271_vm3, %v270_v31, 0.0 }
 0x1f6   :  { %v310_v16 = vmul.f32 %v452_v9, %v253_v11  ;;  %v268_v17 = vmul.f32 %v260_v10, %v253_v11  ;;  %v307_v42 = vmul.f32 %v449_v39, %v250_v34  ;;  %v265_v46 = vmul.f32 %v257_v41, %v250_v34 }
 0x1f7   :  { %v233_v23 = vpop.permute.xlu0 %232 }
 0x1f8   :  { %v325_v20 = vsel %vm271_vm3, %v310_v16, 0.0  ;;  %v284_v21 = vsel %vm271_vm3, %v268_v17, 0.0  ;;  %v251_v28 = vmax.f32 %v216_v56, %v233_v23  ;;  %v316_v49 = vsel %vm271_vm3, %v307_v42, 0.0 }
 0x1f9   :  { %326 = vadd.xlane.f32.xlu1 %v325_v20  ;;  %285 = vadd.xlane.f32.xlu0 %v284_v21  ;;  %v275_v50 = vsel %vm271_vm3, %v265_v46, 0.0 }
 0x1fa   :  { %v308_v37 = vmul.f32 %v450_v32, %v251_v28  ;;  %v266_v38 = vmul.f32 %v258_v33, %v251_v28 }
 0x1fb   :  { %v229_v40 = vpop.permute.xlu0 %228 }
 0x1fc   :  { %v249_v43 = vmax.f32 %v214_v57, %v229_v40  ;;  %v319_v44 = vsel %vm271_vm3, %v308_v37, 0.0  ;;  %v278_v45 = vsel %vm271_vm3, %v266_v38, 0.0 }
 0x1fd   :  { %329 = vadd.xlane.f32.xlu1 %v328_v26  ;;  %288 = vadd.xlane.f32.xlu0 %v287_v29 }
 0x1fe   :  { %v306_v51 = vmul.f32 %v448_v47, %v249_v43  ;;  %v264_v52 = vmul.f32 %v256_v48, %v249_v43 }
 0x200   :  { %v313_v53 = vsel %vm271_vm3, %v306_v51, 0.0  ;;  %v272_v54 = vsel %vm271_vm3, %v264_v52, 0.0 }
 0x201   :  { %332 = vadd.xlane.f32.xlu1 %v331_v35  ;;  %291 = vadd.xlane.f32.xlu0 %v290_v36 }
 0x205   :  { %320 = vadd.xlane.f32.xlu1 %v319_v44  ;;  %279 = vadd.xlane.f32.xlu0 %v278_v45 }
 0x209   :  { %317 = vadd.xlane.f32.xlu1 %v316_v49  ;;  %276 = vadd.xlane.f32.xlu0 %v275_v50 }
 0x20d   :  { %314 = vadd.xlane.f32.xlu1 %v313_v53  ;;  %273 = vadd.xlane.f32.xlu0 %v272_v54 }
 0x22e   :  { %v296_v55 = vpop.xlane.xlu1 %295 }
 0x231   :  { %v336_v56 = vpop.xlane.xlu0 %335 }
 0x232   :  { %v345_v57 = vsel %vm337_vm5, %v296_v55, %v336_v56 }
 0x233   :  { %468 = vmatpush3.msk.msra.mxu1 %vm110_vm1, %v345_v57 }
 0x234   :  { %469 = vmatprep.subr.mxu1 %v516_v4 }
 0x27e   :  { %v324_v58 = vpop.xlane.xlu1 %323  ;;  %v283_v59 = vpop.xlane.xlu0 %282 }
 0x27f   :  { %v341_v8 = vsel %vm337_vm5, %v283_v59, %v324_v58 }
 0x282   :  { %v327_v60 = vpop.xlane.xlu1 %326  ;;  %v286_v61 = vpop.xlane.xlu0 %285 }
 0x283   :  { %v342_v7 = vsel %vm337_vm5, %v286_v61, %v327_v60 }
 0x286   :  { %v330_v62 = vpop.xlane.xlu1 %329  ;;  %v289_v63 = vpop.xlane.xlu0 %288 }
 0x287   :  { %v343_v3 = vsel %vm337_vm5, %v289_v63, %v330_v62 }
 0x28a   :  { %v333_v0 = vpop.xlane.xlu1 %332  ;;  %v292_v1 = vpop.xlane.xlu0 %291 }
 0x28b   :  { %v344_v2 = vsel %vm337_vm5, %v292_v1, %v333_v0 }
 0x28c   :  { %470 = vmatpush3.msra.mxu1 %v344_v2 }
 0x28d   :  { %471 = vmatprep.subr.mxu1 %v516_v4 }
 0x28e   :  { %v321_v5 = vpop.xlane.xlu1 %320  ;;  %472 = vmatpush3.msra.mxu1 %v343_v3  ;;  %v280_v6 = vpop.xlane.xlu0 %279 }
 0x28f   :  { %473 = vmatprep.subr.mxu1 %v516_v4  ;;  %v340_v11 = vsel %vm337_vm5, %v280_v6, %v321_v5 }
 0x290   :  { %474 = vmatpush3.msra.mxu1 %v342_v7 }
 0x291   :  { %475 = vmatprep.subr.mxu1 %v516_v4 }
 0x292   :  { %v318_v9 = vpop.xlane.xlu1 %317  ;;  %476 = vmatpush3.msra.mxu1 %v341_v8  ;;  %v277_v10 = vpop.xlane.xlu0 %276 }
 0x293   :  { %477 = vmatprep.subr.mxu1 %v516_v4  ;;  %v339_v12 = vsel %vm337_vm5, %v277_v10, %v318_v9 }
 0x294   :  { %478 = vmatpush3.msra.mxu1 %v340_v11 }
 0x295   :  { %479 = vmatprep.subr.mxu1 %v516_v4 }
 0x296   :  { %v315_v13 = vpop.xlane.xlu1 %314  ;;  %480 = vmatpush3.msra.mxu1 %v339_v12  ;;  %v274_v14 = vpop.xlane.xlu0 %273 }
 0x297   :  { %481 = vmatprep.subr.mxu1 %v516_v4  ;;  %v338_v16 = vsel %vm337_vm5, %v274_v14, %v315_v13 }
 0x298   :  { %482 = vmatpush3.msra.mxu1 %v338_v16 }
 0x299   :  { %484 = vmatmul.mubr.msk.f32.vlgmr.msra.gmra.mxu1 %vm347_vm6, %v346_v15 }
 0x359   :  { %v420_v17 = vpop.f32.mrf.mxu1 }
 0x35a   :  { %425 = vst.msk [vmem:[#allocation2] sm:$0x3] %vm424_vm7, %v420_v17 }
 0x35b   :  { %v485_v18 = vpop.f32.mrf.mxu1 }
 0x35c   :  { %503 = shalt.err (!%p500_p4)
}
 0x35d   :  { %435 = dma.vmem_to_hbm [thread:$0]  %s433_s20, 32, %s761_s4, [#allocation3]  }
 0x35e   :  { %512 = dma.done.wait [#allocation3], 32  }
 0x35f   :  { %513 = vsyncadd [#allocation3], 4294967264 }
 0x360   :  { %439 = vsyncpa [#allocation3], 1 }

</bundles_post_ra>
